<compile_context>
chip_gen: v5e
topology: v5e:2x2
jax: 0.10.0
libtpu: 0.0.40
codegen_flags: <defaults>
</compile_context>

<pallas_src>
import functools

import jax
import jax.numpy as jnp
from jax.experimental import pallas as pl
from jax.experimental.pallas import tpu as pltpu

_NUM_LAYERS = 6
_RELU_LAYERS = (0, 1, 3, 4)     # layers followed by ReLU; layer 2 = latent, 5 = sigmoid
_BIAS_ROWS = 16                 # bias block row count (keeps slab rows % 16 == 0 for bf16)


def _round_up(n, m):
    return ((n + m - 1) // m) * m


def _autoencoder_kernel(x_ref, p_ref, o_ref, *, pad, bias_row0):
    """x_ref: [TM, PAD] bf16 batch tile.
    p_ref:  [6*PAD + 16, PAD] bf16 parameter slab.
      rows [i*PAD, (i+1)*PAD)        = W_i  (zero-padded [PAD, PAD])
      rows [6*PAD, 6*PAD + 6)        = biases, one zero-padded row per layer."""
    h = x_ref[...]                                            # bf16 [TM, PAD]
    for i in range(_NUM_LAYERS):                              # statically unrolled
        w = p_ref[pl.ds(i * pad, pad), :]                     # bf16 [PAD, PAD]
        b = p_ref[pl.ds(bias_row0 + i, 1), :].astype(jnp.float32)   # f32 [1, PAD]
        z = jnp.dot(h, w, preferred_element_type=jnp.float32) + b   # f32 accumulate
        if i in _RELU_LAYERS:
            z = jnp.maximum(z, 0.0)
        if i + 1 < _NUM_LAYERS:
            h = z.astype(jnp.bfloat16)                        # bf16 operand for next MXU pass
        else:
            # final layer -> Sigmoid; output last dim is lane-dense (dense vst)
            o_ref[...] = jax.nn.sigmoid(z).astype(o_ref.dtype)


def pack_params(params, pad):
    """Pack [(W[in,out], b[out])] * 6 into one zero-padded bf16 slab."""
    assert len(params) == _NUM_LAYERS
    rows = _NUM_LAYERS * pad + _BIAS_ROWS
    slab = jnp.zeros((rows, pad), jnp.float32)
    for i, (w, b) in enumerate(params):
        fan_in, fan_out = w.shape
        assert fan_in <= pad and fan_out <= pad
        slab = slab.at[i * pad: i * pad + fan_in, :fan_out].set(w)
        slab = slab.at[_NUM_LAYERS * pad + i, :fan_out].set(b)
    return slab.astype(jnp.bfloat16)


def autoencoder_forward(x, params, *, batch_tile=2048):
    """x: [batch, input_dim]. params: list of 6 (W[in,out], b[out]) f32 arrays.
    Returns bf16 [batch, input_dim]."""
    batch, input_dim = x.shape

    # Lane pad for every feature dim (single width keeps the slab layout simple).
    all_dims = [input_dim] + [w.shape[1] for (w, _) in params]
    pad = _round_up(max(all_dims), 128)

    slab = pack_params(params, pad)
    slab_bytes = slab.size * slab.dtype.itemsize

    # --- batch tile selection -------------------------------------------------
    tm = min(batch_tile, _round_up(batch, 16))
    # v7x: guarantee >=2 grid steps so the "parallel" axis can shard across 2 TCs.
    two_step = _round_up((batch + 1) // 2, 16)
    if 16 <= two_step < tm:
        tm = two_step

    # VMEM guardrail (v5e: 16 MiB scoped default; v7x: 64 MiB physical).
    def _vmem_estimate(t):
        io = 2 * 2 * t * pad * 2          # x + out, double-buffered, bf16
        tmp = 8 * t * pad * 4             # generous f32 activation temporaries
        return 2 * slab_bytes + io + tmp

    _VMEM_CAP = 48 * 1024 * 1024
    while _vmem_estimate(tm) > _VMEM_CAP and tm > 16:
        tm = max(16, _round_up(tm // 2, 16))
    vmem_limit = int(min(max(_vmem_estimate(tm), 16 * 1024 * 1024), _VMEM_CAP))

    b_pad = _round_up(batch, tm)

    # --- input: skip the pad pass entirely when shapes are already aligned -----
    if batch == b_pad and input_dim == pad:
        x_p = x if x.dtype == jnp.bfloat16 else x.astype(jnp.bfloat16)
    else:
        x_p = (jnp.zeros((b_pad, pad), jnp.bfloat16)
               .at[:batch, :input_dim].set(x.astype(jnp.bfloat16)))

    kernel = functools.partial(_autoencoder_kernel, pad=pad,
                               bias_row0=_NUM_LAYERS * pad)

    out_p = pl.pallas_call(
        kernel,
        out_shape=jax.ShapeDtypeStruct((b_pad, pad), jnp.bfloat16),
        grid_spec=pltpu.PrefetchScalarGridSpec(
            num_scalar_prefetch=0,
            grid=(b_pad // tm,),
            in_specs=[
                pl.BlockSpec((tm, pad), lambda m: (m, 0)),    # batch tile of x
                pl.BlockSpec(slab.shape, lambda m: (0, 0)),   # params, VMEM-resident
            ],
            out_specs=pl.BlockSpec((tm, pad), lambda m: (m, 0)),
        ),
        compiler_params=pltpu.CompilerParams(
            dimension_semantics=("parallel",),
            vmem_limit_bytes=vmem_limit,
        ),
    )(x_p, slab)

    # Strip padding only if it was added (aligned production shapes pass through).
    if batch != b_pad or input_dim != pad:
        out_p = out_p[:batch, :input_dim]
    return out_p


def init_params(key, input_dim, hidden_dim, latent_dim):
    """Deterministic init mimicking PyTorch's U(-1/sqrt(fan_in), 1/sqrt(fan_in)).
    Weights are already transposed to [in, out]."""
    dims = [
        (input_dim, hidden_dim),
        (hidden_dim, hidden_dim // 2),
        (hidden_dim // 2, latent_dim),
        (latent_dim, hidden_dim // 2),
        (hidden_dim // 2, hidden_dim),
        (hidden_dim, input_dim),
    ]
    params = []
    for (fan_in, fan_out) in dims:
        key, kw, kb = jax.random.split(key, 3)
        bound = 1.0 / jnp.sqrt(jnp.float32(fan_in))
        w = jax.random.uniform(kw, (fan_in, fan_out), jnp.float32, -bound, bound)
        b = jax.random.uniform(kb, (fan_out,), jnp.float32, -bound, bound)
        params.append((w, b))
    return params


def reference_forward(x, params):
    h = x
    # encoder
    h = jnp.maximum(h @ params[0][0] + params[0][1], 0.0)
    h = jnp.maximum(h @ params[1][0] + params[1][1], 0.0)
    z = h @ params[2][0] + params[2][1]
    # decoder
    h = jnp.maximum(z @ params[3][0] + params[3][1], 0.0)
    h = jnp.maximum(h @ params[4][0] + params[4][1], 0.0)
    y = h @ params[5][0] + params[5][1]
    return jax.nn.sigmoid(y)


if __name__ == "__main__":
    input_dim, hidden_dim, latent_dim = 64, 32, 8
    batch = 8

    key = jax.random.PRNGKey(0)
    key, kx = jax.random.split(key)
    x = jax.random.normal(kx, (batch, input_dim), jnp.float32)

    params = init_params(key, input_dim, hidden_dim, latent_dim)

    out = autoencoder_forward(x, params)
    out = jax.block_until_ready(out)

    ref = reference_forward(x, params)
    assert out.shape == (batch, input_dim)
    # bf16 weights/activations -> loosened tolerance vs. the f32 reference.
    assert jnp.allclose(out.astype(jnp.float32), ref, atol=3e-2, rtol=3e-2), \
        "mismatch vs reference"

    print("KERNEL_OK")
</pallas_src>

<mosaic_0001>
module attributes {stable_mosaic.version = 11 : i64} {
  func.func @_autoencoder_kernel(%arg0: i32, %arg1: memref<16x128xbf16, #tpu.memory_space<vmem>>, %arg2: memref<784x128xbf16, #tpu.memory_space<vmem>>, %arg3: memref<16x128xbf16, #tpu.memory_space<vmem>>) attributes {dimension_semantics = [#tpu.dimension_semantics<parallel>], iteration_bounds = array<i64: 1>, scalar_prefetch = 0 : i64, scratch_operands = 0 : i64, tpu.core_type = #tpu.core_type<tc>, window_params = [{transform_indices = @transform_0, window_bounds = array<i64: 16, 128>}, {pipeline_mode = #tpu.pipeline_mode<synchronous>, transform_indices = @transform_1, window_bounds = array<i64: 784, 128>}, {transform_indices = @transform_2, window_bounds = array<i64: 16, 128>}]} {
    %c0 = arith.constant 0 : index
    %c0_0 = arith.constant 0 : index
    %0 = vector.load %arg1[%c0, %c0_0] : memref<16x128xbf16, #tpu.memory_space<vmem>>, vector<16x128xbf16>
    %c0_1 = arith.constant 0 : index
    %c0_2 = arith.constant 0 : index
    %1 = vector.load %arg2[%c0_1, %c0_2] : memref<784x128xbf16, #tpu.memory_space<vmem>>, vector<128x128xbf16>
    %c768 = arith.constant 768 : index
    %c0_3 = arith.constant 0 : index
    %2 = vector.load %arg2[%c768, %c0_3] : memref<784x128xbf16, #tpu.memory_space<vmem>>, vector<1x128xbf16>
    %3 = arith.extf %2 : vector<1x128xbf16> to vector<1x128xf32>
    %cst = arith.constant dense<0.000000e+00> : vector<16x128xf32>
    %4 = tpu.matmul %0, %1, %cst {dimension_numbers = #tpu.dot_dimension_numbers<[1], [0], [0], [1], [0, 0, 1, 1], [], []>} : vector<16x128xbf16>, vector<128x128xbf16>, vector<16x128xf32> -> vector<16x128xf32>
    %5 = vector.broadcast %3 : vector<1x128xf32> to vector<16x128xf32>
    %6 = arith.addf %4, %5 : vector<16x128xf32>
    %cst_4 = arith.constant 0.000000e+00 : f32
    %7 = vector.broadcast %cst_4 : f32 to vector<16x128xf32>
    %8 = arith.maximumf %6, %7 : vector<16x128xf32>
    %9 = arith.truncf %8 : vector<16x128xf32> to vector<16x128xbf16>
    %c128 = arith.constant 128 : index
    %c0_5 = arith.constant 0 : index
    %10 = vector.load %arg2[%c128, %c0_5] : memref<784x128xbf16, #tpu.memory_space<vmem>>, vector<128x128xbf16>
    %c769 = arith.constant 769 : index
    %c0_6 = arith.constant 0 : index
    %11 = vector.load %arg2[%c769, %c0_6] : memref<784x128xbf16, #tpu.memory_space<vmem>>, vector<1x128xbf16>
    %12 = arith.extf %11 : vector<1x128xbf16> to vector<1x128xf32>
    %cst_7 = arith.constant dense<0.000000e+00> : vector<16x128xf32>
    %13 = tpu.matmul %9, %10, %cst_7 {dimension_numbers = #tpu.dot_dimension_numbers<[1], [0], [0], [1], [0, 0, 1, 1], [], []>} : vector<16x128xbf16>, vector<128x128xbf16>, vector<16x128xf32> -> vector<16x128xf32>
    %14 = vector.broadcast %12 : vector<1x128xf32> to vector<16x128xf32>
    %15 = arith.addf %13, %14 : vector<16x128xf32>
    %cst_8 = arith.constant 0.000000e+00 : f32
    %16 = vector.broadcast %cst_8 : f32 to vector<16x128xf32>
    %17 = arith.maximumf %15, %16 : vector<16x128xf32>
    %18 = arith.truncf %17 : vector<16x128xf32> to vector<16x128xbf16>
    %c256 = arith.constant 256 : index
    %c0_9 = arith.constant 0 : index
    %19 = vector.load %arg2[%c256, %c0_9] : memref<784x128xbf16, #tpu.memory_space<vmem>>, vector<128x128xbf16>
    %c770 = arith.constant 770 : index
    %c0_10 = arith.constant 0 : index
    %20 = vector.load %arg2[%c770, %c0_10] : memref<784x128xbf16, #tpu.memory_space<vmem>>, vector<1x128xbf16>
    %21 = arith.extf %20 : vector<1x128xbf16> to vector<1x128xf32>
    %cst_11 = arith.constant dense<0.000000e+00> : vector<16x128xf32>
    %22 = tpu.matmul %18, %19, %cst_11 {dimension_numbers = #tpu.dot_dimension_numbers<[1], [0], [0], [1], [0, 0, 1, 1], [], []>} : vector<16x128xbf16>, vector<128x128xbf16>, vector<16x128xf32> -> vector<16x128xf32>
    %23 = vector.broadcast %21 : vector<1x128xf32> to vector<16x128xf32>
    %24 = arith.addf %22, %23 : vector<16x128xf32>
    %25 = arith.truncf %24 : vector<16x128xf32> to vector<16x128xbf16>
    %c384 = arith.constant 384 : index
    %c0_12 = arith.constant 0 : index
    %26 = vector.load %arg2[%c384, %c0_12] : memref<784x128xbf16, #tpu.memory_space<vmem>>, vector<128x128xbf16>
    %c771 = arith.constant 771 : index
    %c0_13 = arith.constant 0 : index
    %27 = vector.load %arg2[%c771, %c0_13] : memref<784x128xbf16, #tpu.memory_space<vmem>>, vector<1x128xbf16>
    %28 = arith.extf %27 : vector<1x128xbf16> to vector<1x128xf32>
    %cst_14 = arith.constant dense<0.000000e+00> : vector<16x128xf32>
    %29 = tpu.matmul %25, %26, %cst_14 {dimension_numbers = #tpu.dot_dimension_numbers<[1], [0], [0], [1], [0, 0, 1, 1], [], []>} : vector<16x128xbf16>, vector<128x128xbf16>, vector<16x128xf32> -> vector<16x128xf32>
    %30 = vector.broadcast %28 : vector<1x128xf32> to vector<16x128xf32>
    %31 = arith.addf %29, %30 : vector<16x128xf32>
    %cst_15 = arith.constant 0.000000e+00 : f32
    %32 = vector.broadcast %cst_15 : f32 to vector<16x128xf32>
    %33 = arith.maximumf %31, %32 : vector<16x128xf32>
    %34 = arith.truncf %33 : vector<16x128xf32> to vector<16x128xbf16>
    %c512 = arith.constant 512 : index
    %c0_16 = arith.constant 0 : index
    %35 = vector.load %arg2[%c512, %c0_16] : memref<784x128xbf16, #tpu.memory_space<vmem>>, vector<128x128xbf16>
    %c772 = arith.constant 772 : index
    %c0_17 = arith.constant 0 : index
    %36 = vector.load %arg2[%c772, %c0_17] : memref<784x128xbf16, #tpu.memory_space<vmem>>, vector<1x128xbf16>
    %37 = arith.extf %36 : vector<1x128xbf16> to vector<1x128xf32>
    %cst_18 = arith.constant dense<0.000000e+00> : vector<16x128xf32>
    %38 = tpu.matmul %34, %35, %cst_18 {dimension_numbers = #tpu.dot_dimension_numbers<[1], [0], [0], [1], [0, 0, 1, 1], [], []>} : vector<16x128xbf16>, vector<128x128xbf16>, vector<16x128xf32> -> vector<16x128xf32>
    %39 = vector.broadcast %37 : vector<1x128xf32> to vector<16x128xf32>
    %40 = arith.addf %38, %39 : vector<16x128xf32>
    %cst_19 = arith.constant 0.000000e+00 : f32
    %41 = vector.broadcast %cst_19 : f32 to vector<16x128xf32>
    %42 = arith.maximumf %40, %41 : vector<16x128xf32>
    %43 = arith.truncf %42 : vector<16x128xf32> to vector<16x128xbf16>
    %c640 = arith.constant 640 : index
    %c0_20 = arith.constant 0 : index
    %44 = vector.load %arg2[%c640, %c0_20] : memref<784x128xbf16, #tpu.memory_space<vmem>>, vector<128x128xbf16>
    %c773 = arith.constant 773 : index
    %c0_21 = arith.constant 0 : index
    %45 = vector.load %arg2[%c773, %c0_21] : memref<784x128xbf16, #tpu.memory_space<vmem>>, vector<1x128xbf16>
    %46 = arith.extf %45 : vector<1x128xbf16> to vector<1x128xf32>
    %cst_22 = arith.constant dense<0.000000e+00> : vector<16x128xf32>
    %47 = tpu.matmul %43, %44, %cst_22 {dimension_numbers = #tpu.dot_dimension_numbers<[1], [0], [0], [1], [0, 0, 1, 1], [], []>} : vector<16x128xbf16>, vector<128x128xbf16>, vector<16x128xf32> -> vector<16x128xf32>
    %48 = vector.broadcast %46 : vector<1x128xf32> to vector<16x128xf32>
    %49 = arith.addf %47, %48 : vector<16x128xf32>
    %50 = arith.negf %49 : vector<16x128xf32>
    %51 = math.exp %50 : vector<16x128xf32>
    %cst_23 = arith.constant 1.000000e+00 : f32
    %52 = vector.broadcast %cst_23 : f32 to vector<16x128xf32>
    %53 = arith.addf %52, %51 : vector<16x128xf32>
    %54 = arith.divf %52, %53 : vector<16x128xf32>
    %55 = arith.truncf %54 : vector<16x128xf32> to vector<16x128xbf16>
    %c0_24 = arith.constant 0 : index
    %c0_25 = arith.constant 0 : index
    %56 = vector.load %arg3[%c0_24, %c0_25] : memref<16x128xbf16, #tpu.memory_space<vmem>>, vector<16x128xbf16>
    tpu.vector_store %arg3[%c0_24, %c0_25], %55 {strides = array<i32>} : memref<16x128xbf16, #tpu.memory_space<vmem>>, vector<16x128xbf16>,
    return
  }
  func.func @transform_0(%arg0: i32) -> (i32, i32) {
    %c0_i32 = arith.constant 0 : i32
    %c0_i32_0 = arith.constant 0 : i32
    return %arg0, %c0_i32 : i32, i32
  }
  func.func @transform_1(%arg0: i32) -> (i32, i32) {
    %c0_i32 = arith.constant 0 : i32
    %c0_i32_0 = arith.constant 0 : i32
    %c0_i32_1 = arith.constant 0 : i32
    return %c0_i32, %c0_i32_0 : i32, i32
  }
  func.func @transform_2(%arg0: i32) -> (i32, i32) {
    %c0_i32 = arith.constant 0 : i32
    %c0_i32_0 = arith.constant 0 : i32
    return %arg0, %c0_i32 : i32, i32
  }
}

</mosaic_0001>

<bundles_post_ra>
// kernel: tpu_custom_call.1
= control target key start
LH: loop header
LB: loop body
LE: loop exit
PB: predicated region body
PF: predicated region fallthrough
CT: control target
= control target key end

     0   :  { %7 = vsyncpa [#allocation3], 0  ;;  %s988_s0 = inlined_call_operand.hbm [shape: bf16[16,128], index: 0, kind: input, shape index: {}]   ;;  %s989_s1 = inlined_call_operand.hbm [shape: bf16[784,128], index: 1, kind: input, shape index: {}]   ;;  %s990_s2 = inlined_call_operand.hbm [shape: bf16[16,128], index: 2, kind: output, shape index: {}]  }
   0x1   :  { %8 = vsyncpa [#allocation6], 0 }
   0x2   :  { %9 = vsyncpa [#allocation4], 0  ;;  %s14_s11 = sshll.u32 %s988_s0, 4  ;;  %s950_s12 = smov [#allocation2]   ;;  %s15_s11 = int_to_ptr.hbm [resolvable:$true] %s14_s11 }
   0x3   :  { %s16_s13 = sshll.u32 %s950_s12, 4  ;;  %s27_s16 = sshll.u32 %s989_s1, 4  ;;  %s17_s13 = int_to_ptr.vmem [resolvable:$true] %s16_s13  ;;  %s28_s16 = int_to_ptr.hbm [resolvable:$true] %s27_s16 }
   0x4   :  { %s951_s17 = smov 64   ;;  %s952_s18 = smov 4  }
   0x5   :  { %22 = dma.hbm_to_vmem [thread:$0]  %s15_s11, 128, %s17_s13, [#allocation3], %s951_s17, %s951_s17, %s952_s18  }
   0x6   :  { %s953_s19 = smov [#allocation5]  }
   0x7   :  { %s29_s20 = sshll.u32 %s953_s19, 4  ;;  %s30_s20 = int_to_ptr.vmem [resolvable:$true] %s29_s20 }
   0x8   :  { %35 = dma.hbm_to_vmem [thread:$0]  %s28_s16, 6272, %s30_s20, [#allocation6], %s951_s17, %s951_s17, %s952_s18  }
   0x9   :  { %944 = dma.done.wait [#allocation3], 128  }
   0xa   :  { %945 = vsyncadd [#allocation3], 4294967168 }
   0xb   :  { %946 = dma.done.wait [#allocation6], 6272  }
   0xc   :  { %947 = vsyncadd [#allocation6], 4294961024  ;;  %v813_v0 = vld [vmem:[#allocation5 + $0x38] sm:$0xff]  ;;  %v812_v1 = vld [vmem:[#allocation5 + $0x30] sm:$0xff]  ;;  %s954_s0 = smov [#allocation7]   ;;  %s593_s23 = sshll.u32 %s990_s2, 4  ;;  %s594_s23 = int_to_ptr.hbm [resolvable:$true] %s593_s23 }
   0xd   :  { %119 = vmatpush.bf16.msra.mxu0 %v813_v0  ;;  %v821_v2 = vld [vmem:[#allocation5 + $0x78] sm:$0xff]  ;;  %v820_v3 = vld [vmem:[#allocation5 + $0x70] sm:$0xff]  ;;  %v811_v4 = vld [vmem:[#allocation5 + $0x28] sm:$0xff]  ;;  %s591_s1 = sshll.u32 %s954_s0, 4  ;;  %s592_s1 = int_to_ptr.vmem [resolvable:$true] %s591_s1 }
   0xe   :  { %201 = vmatpush.bf16.msra.mxu1 %v821_v2  ;;  %v819_v5 = vld [vmem:[#allocation5 + $0x68] sm:$0xff]  ;;  %v810_v6 = vld [vmem:[#allocation5 + $0x20] sm:$0xff]  ;;  %v809_v8 = vld [vmem:[#allocation5 + $0x18] sm:$0xff] }
   0xf   :  { %v818_v7 = vld [vmem:[#allocation5 + $0x60] sm:$0xff]  ;;  %v808_v9 = vld [vmem:[#allocation5 + $0x10] sm:$0xff]  ;;  %v807_v10 = vld [vmem:[#allocation5 + $0x8] sm:$0xff] }
  0x10   :  { %v806_v11 = vld [vmem:[#allocation5] sm:$0xff]  ;;  %v805_v12 = vld [vmem:[#allocation2] sm:$0xff]  ;;  %v816_v14 = vld [vmem:[#allocation5 + $0x50] sm:$0xff] }
  0x11   :  { %120 = vmatpush.bf16.msra.mxu0 %v812_v1  ;;  %v817_v13 = vld [vmem:[#allocation5 + $0x58] sm:$0xff]  ;;  %v815_v15 = vld [vmem:[#allocation5 + $0x48] sm:$0xff]  ;;  %v814_v16 = vld [vmem:[#allocation5 + $0x40] sm:$0xff] }
  0x12   :  { %202 = vmatpush.bf16.msra.mxu1 %v820_v3  ;;  %v829_v17 = vld [vmem:[#allocation5 + $0xb8] sm:$0xff]  ;;  %v828_v18 = vld [vmem:[#allocation5 + $0xb0] sm:$0xff]  ;;  %v827_v19 = vld [vmem:[#allocation5 + $0xa8] sm:$0xff] }
  0x13   :  { %285 = vmatpush.bf16.msra.mxu2 %v829_v17  ;;  %v826_v20 = vld [vmem:[#allocation5 + $0xa0] sm:$0xff]  ;;  %v825_v31 = vld [vmem:[#allocation5 + $0x98] sm:$0xff]  ;;  %v824_v32 = vld [vmem:[#allocation5 + $0x90] sm:$0xff] }
  0x14   :  { %v62_v21 = vld [vmem:[#allocation5 + $0x180] sm:$0x1]  ;;  %v823_v33 = vld [vmem:[#allocation5 + $0x88] sm:$0xff]  ;;  %v837_v35 = vld [vmem:[#allocation5 + $0xf8] sm:$0xff] }
  0x15   :  { %121 = vmatpush.bf16.msra.mxu0 %v811_v4  ;;  %v63_v22 = vunpack.c.l.bf16 %v62_v21  ;;  %v822_v34 = vld [vmem:[#allocation5 + $0x80] sm:$0xff]  ;;  %365 = vmatpush.bf16.msra.mxu3 %v837_v35  ;;  %v836_v36 = vld [vmem:[#allocation5 + $0xf0] sm:$0xff]  ;;  %v835_v37 = vld [vmem:[#allocation5 + $0xe8] sm:$0xff] }
  0x16   :  { %203 = vmatpush.bf16.msra.mxu1 %v819_v5  ;;  %v834_v38 = vld [vmem:[#allocation5 + $0xe0] sm:$0xff]  ;;  %v833_v39 = vld [vmem:[#allocation5 + $0xd8] sm:$0xff]  ;;  %v832_v48 = vld [vmem:[#allocation5 + $0xd0] sm:$0xff] }
  0x17   :  { %286 = vmatpush.bf16.msra.mxu2 %v828_v18  ;;  %v64_v24 = vperm.slane %v63_v22, 0  ;;  %v152_v41 = vperm.slane %v63_v22, 1  ;;  %v831_v49 = vld [vmem:[#allocation5 + $0xc8] sm:$0xff]  ;;  %v830_v50 = vld [vmem:[#allocation5 + $0xc0] sm:$0xff]  ;;  %v845_v51 = vld [vmem:[#allocation5 + $0x138] sm:$0xff] }
  0x18   :  { %v844_v52 = vld [vmem:[#allocation5 + $0x130] sm:$0xff]  ;;  %v843_v53 = vld [vmem:[#allocation5 + $0x128] sm:$0xff]  ;;  %v842_v54 = vld [vmem:[#allocation5 + $0x120] sm:$0xff] }
  0x19   :  { %122 = vmatpush.bf16.msra.mxu0 %v810_v6  ;;  %366 = vmatpush.bf16.msra.mxu3 %v836_v36  ;;  %v234_v55 = vld [vmem:[#allocation5 + $0x180] sm:$0x2]  ;;  %v841_v63 = vld [vmem:[#allocation5 + $0x118] sm:$0xff]  ;;  %v840_v0 = vld [vmem:[#allocation5 + $0x110] sm:$0xff] }
  0x1a   :  { %204 = vmatpush.bf16.msra.mxu1 %v818_v7  ;;  %v235_v57 = vunpack.c.l.bf16 %v234_v55  ;;  %v839_v1 = vld [vmem:[#allocation5 + $0x108] sm:$0xff]  ;;  %v838_v2 = vld [vmem:[#allocation5 + $0x100] sm:$0xff]  ;;  %v853_v3 = vld [vmem:[#allocation5 + $0x178] sm:$0xff] }
  0x1b   :  { %287 = vmatpush.bf16.msra.mxu2 %v827_v19  ;;  %v852_v4 = vld [vmem:[#allocation5 + $0x170] sm:$0xff]  ;;  %v851_v5 = vld [vmem:[#allocation5 + $0x168] sm:$0xff]  ;;  %v850_v6 = vld [vmem:[#allocation5 + $0x160] sm:$0xff] }
  0x1c   :  { %v236_v58 = vperm.slane %v235_v57, 2  ;;  %v847_v17 = vld [vmem:[#allocation5 + $0x148] sm:$0xff]  ;;  %v846_v18 = vld [vmem:[#allocation5 + $0x140] sm:$0xff] }
  0x1d   :  { %123 = vmatpush.bf16.msra.mxu0 %v809_v8  ;;  %367 = vmatpush.bf16.msra.mxu3 %v835_v37  ;;  %v316_v8 = vperm.slane %v235_v57, 3  ;;  %v398_v19 = vld [vmem:[#allocation5 + $0x180] sm:$0x4] }
  0x1e   :  { %205 = vmatpush.bf16.msra.mxu1 %v817_v13 }
  0x1f   :  { %288 = vmatpush.bf16.msra.mxu2 %v826_v20  ;;  %v399_v20 = vunpack.c.l.bf16 %v398_v19 }
  0x21   :  { %124 = vmatpush.bf16.msra.mxu0 %v808_v9  ;;  %368 = vmatpush.bf16.msra.mxu3 %v834_v38  ;;  %v400_v22 = vperm.slane %v399_v20, 4 }
  0x22   :  { %206 = vmatpush.bf16.msra.mxu1 %v816_v14 }
  0x23   :  { %289 = vmatpush.bf16.msra.mxu2 %v825_v31 }
  0x25   :  { %125 = vmatpush.bf16.msra.mxu0 %v807_v10  ;;  %369 = vmatpush.bf16.msra.mxu3 %v833_v39 }
  0x26   :  { %207 = vmatpush.bf16.msra.mxu1 %v815_v15  ;;  %v849_v15 = vld [vmem:[#allocation5 + $0x158] sm:$0xff] }
  0x27   :  { %290 = vmatpush.bf16.msra.mxu2 %v824_v32 }
  0x29   :  { %126 = vmatpush.bf16.msra.mxu0 %v806_v11  ;;  %370 = vmatpush.bf16.msra.mxu3 %v832_v48 }
  0x2a   :  { %208 = vmatpush.bf16.msra.mxu1 %v814_v16  ;;  %v848_v16 = vld [vmem:[#allocation5 + $0x150] sm:$0xff] }
  0x2b   :  { %291 = vmatpush.bf16.msra.mxu2 %v823_v33 }
  0x2c   :  { %127 = vmatmul.bf16.vlgmr.msra.gmra.mxu0 %v805_v12 }
  0x2d   :  { %371 = vmatpush.bf16.msra.mxu3 %v831_v49  ;;  %449 = vmatpush.bf16.msrb.mxu0 %v845_v51 }
  0x2e   :  { %531 = vmatpush.bf16.msrb.mxu1 %v853_v3 }
  0x2f   :  { %292 = vmatpush.bf16.msra.mxu2 %v822_v34 }
  0x31   :  { %372 = vmatpush.bf16.msra.mxu3 %v830_v50  ;;  %450 = vmatpush.bf16.msrb.mxu0 %v844_v52 }
  0x32   :  { %532 = vmatpush.bf16.msrb.mxu1 %v852_v4 }
  0x35   :  { %451 = vmatpush.bf16.msrb.mxu0 %v843_v53 }
  0x36   :  { %533 = vmatpush.bf16.msrb.mxu1 %v851_v5 }
  0x39   :  { %452 = vmatpush.bf16.msrb.mxu0 %v842_v54 }
  0x3a   :  { %534 = vmatpush.bf16.msrb.mxu1 %v850_v6 }
  0x3d   :  { %453 = vmatpush.bf16.msrb.mxu0 %v841_v63 }
  0x3e   :  { %535 = vmatpush.bf16.msrb.mxu1 %v849_v15 }
  0x41   :  { %454 = vmatpush.bf16.msrb.mxu0 %v840_v0 }
  0x42   :  { %536 = vmatpush.bf16.msrb.mxu1 %v848_v16 }
  0x45   :  { %455 = vmatpush.bf16.msrb.mxu0 %v839_v1 }
  0x46   :  { %537 = vmatpush.bf16.msrb.mxu1 %v847_v17 }
  0x49   :  { %456 = vmatpush.bf16.msrb.mxu0 %v838_v2 }
  0x4a   :  { %538 = vmatpush.bf16.msrb.mxu1 %v846_v18 }
  0xa9   :  { %v128_v23 = vpop.f32.mrf.mxu0 }
  0xaa   :  { %v129_v25 = vadd.f32 %v128_v23, %v64_v24 }
  0xac   :  { %v133_v28 = vmax.f32 %v129_v25, 0.0 }
  0xb1   :  { %v130_v26 = vpop.f32.mrf.mxu0 }
  0xb2   :  { %v131_v27 = vadd.f32 %v130_v26, %v64_v24 }
  0xb4   :  { %v134_v29 = vmax.f32 %v131_v27, 0.0 }
  0xb6   :  { %v135_v30 = vpack.c.bf16 %v134_v29, %v133_v28  ;;  %v482_v29 = vperm.slane %v399_v20, 5 }
  0xb8   :  { %209 = vmatmul.bf16.vlgmr.msra.gmra.mxu1 %v135_v30 }
 0x135   :  { %v210_v40 = vpop.f32.mrf.mxu1 }
 0x136   :  { %v211_v42 = vadd.f32 %v210_v40, %v152_v41 }
 0x138   :  { %v215_v45 = vmax.f32 %v211_v42, 0.0 }
 0x13d   :  { %v212_v43 = vpop.f32.mrf.mxu1 }
 0x13e   :  { %v213_v44 = vadd.f32 %v212_v43, %v152_v41 }
 0x140   :  { %v216_v46 = vmax.f32 %v213_v44, 0.0 }
 0x142   :  { %v217_v47 = vpack.c.bf16 %v216_v46, %v215_v45 }
 0x144   :  { %293 = vmatmul.bf16.vlgmr.msra.gmra.mxu2 %v217_v47 }
 0x1c7   :  { %v294_v56 = vpop.f32.mrf.mxu2 }
 0x1c8   :  { %v295_v60 = vadd.f32 %v294_v56, %v236_v58 }
 0x1cf   :  { %v296_v59 = vpop.f32.mrf.mxu2 }
 0x1d0   :  { %v297_v61 = vadd.f32 %v296_v59, %v236_v58 }
 0x1d2   :  { %v299_v62 = vpack.c.bf16 %v297_v61, %v295_v60 }
 0x1d4   :  { %373 = vmatmul.bf16.vlgmr.msra.gmra.mxu3 %v299_v62 }
 0x257   :  { %v374_v7 = vpop.f32.mrf.mxu3 }
 0x258   :  { %v375_v9 = vadd.f32 %v374_v7, %v316_v8 }
 0x25a   :  { %v379_v12 = vmax.f32 %v375_v9, 0.0 }
 0x25f   :  { %v376_v10 = vpop.f32.mrf.mxu3 }
 0x260   :  { %v377_v11 = vadd.f32 %v376_v10, %v316_v8 }
 0x262   :  { %v380_v13 = vmax.f32 %v377_v11, 0.0 }
 0x264   :  { %v381_v14 = vpack.c.bf16 %v380_v13, %v379_v12 }
 0x266   :  { %457 = vmatmul.bf16.vlgmr.msrb.gmra.mxu0 %v381_v14 }
 0x2e3   :  { %v458_v21 = vpop.f32.mrf.mxu0 }
 0x2e4   :  { %v459_v23 = vadd.f32 %v458_v21, %v400_v22 }
 0x2e6   :  { %v463_v26 = vmax.f32 %v459_v23, 0.0 }
 0x2eb   :  { %v460_v24 = vpop.f32.mrf.mxu0 }
 0x2ec   :  { %v461_v25 = vadd.f32 %v460_v24, %v400_v22 }
 0x2ee   :  { %v464_v27 = vmax.f32 %v461_v25, 0.0 }
 0x2f0   :  { %v465_v28 = vpack.c.bf16 %v464_v27, %v463_v26 }
 0x2f2   :  { %539 = vmatmul.bf16.vlgmr.msrb.gmra.mxu1 %v465_v28 }
 0x36f   :  { %v540_v30 = vpop.f32.mrf.mxu1 }
 0x370   :  { %v541_v31 = vadd.f32 %v540_v30, %v482_v29 }
 0x372   :  { %v803_v32 = vmul.f32 -1.442695, %v541_v31 }
 0x374   :  { %864 = vpow2.f32 %v803_v32 }
 0x377   :  { %v542_v33 = vpop.f32.mrf.mxu1 }
 0x378   :  { %v543_v34 = vadd.f32 %v542_v33, %v482_v29 }
 0x37a   :  { %v865_v35 = vpop.eup %864  ;;  %v804_v36 = vmul.f32 -1.442695, %v543_v34 }
 0x37b   :  { %v551_v37 = vadd.f32 1.0, %v865_v35 }
 0x37c   :  { %866 = vpow2.f32 %v804_v36 }
 0x37d   :  { %868 = vrcp.f32 %v551_v37  ;;  %vm558_vm1 = vweird.f32 %v551_v37  ;;  %v564_v48 = vand.u32 2147483648, %v551_v37  ;;  %v562_v50 = vand.u32 2147483647, %v551_v37 }
 0x37f   :  { %v565_v55 = vor.u32 1.1754944e-38, %v564_v48  ;;  %vm563_vm6 = vcmp.eq.f32.partialorder %v562_v50, 8.507059e+37 }
 0x382   :  { %v867_v38 = vpop.eup %866 }
 0x383   :  { %v869_v39 = vpop.eup %868  ;;  %v552_v40 = vadd.f32 1.0, %v867_v38 }
 0x384   :  { %v554_v41 = vmul.f32 %v869_v39, %v551_v37  ;;  %vm559_vm0 = vweird.f32 %v869_v39 }
 0x385   :  { %870 = vrcp.f32 %v552_v40  ;;  %v579_v49 = vand.u32 2147483648, %v552_v40  ;;  %v577_v52 = vand.u32 2147483647, %v552_v40  ;;  %vm560_vm3 = vmor %vm558_vm1, %vm559_vm0  ;;  %vm573_vm4 = vweird.f32 %v552_v40 }
 0x386   :  { %v555_v42 = vsub.f32 1.0, %v554_v41 }
 0x387   :  { %v580_v56 = vor.u32 1.1754944e-38, %v579_v49  ;;  %vm578_vm7 = vcmp.eq.f32.partialorder %v577_v52, 8.507059e+37 }
 0x388   :  { %v556_v43 = vmul.f32 %v869_v39, %v555_v42 }
 0x38a   :  { %v557_v47 = vadd.f32 %v869_v39, %v556_v43 }
 0x38b   :  { %v871_v44 = vpop.eup %870 }
 0x38c   :  { %v569_v45 = vmul.f32 %v871_v44, %v552_v40  ;;  %vm574_vm2 = vweird.f32 %v871_v44  ;;  %v561_v53 = vsel %vm560_vm3, %v869_v39, %v557_v47 }
 0x38d   :  { %vm575_vm5 = vmor %vm573_vm4, %vm574_vm2  ;;  %v566_v58 = vsel %vm563_vm6, %v565_v55, %v561_v53 }
 0x38e   :  { %v570_v46 = vsub.f32 1.0, %v569_v45 }
 0x390   :  { %v571_v51 = vmul.f32 %v871_v44, %v570_v46 }
 0x392   :  { %v572_v54 = vadd.f32 %v871_v44, %v571_v51 }
 0x394   :  { %v576_v57 = vsel %vm575_vm5, %v871_v44, %v572_v54 }
 0x395   :  { %v581_v59 = vsel %vm578_vm7, %v580_v56, %v576_v57 }
 0x396   :  { %v857_v60 = vpack.c.bf16 %v581_v59, %v566_v58 }
 0x398   :  { %858 = vst [vmem:[#allocation7] sm:$0xff] %v857_v60  }
 0x399   :  { %599 = dma.vmem_to_hbm [thread:$0]  %s592_s1, 128, %s594_s23, [#allocation4], %s951_s17, %s951_s17, %s952_s18  }
 0x39a   :  { %948 = dma.done.wait [#allocation4], 128  }
 0x39b   :  { %949 = vsyncadd [#allocation4], 4294967168 }
 0x39c   :  { %604 = vsyncpa [#allocation3], 1 }
 0x39d   :  { %605 = vsyncpa [#allocation6], 1 }
 0x39e   :  { %606 = vsyncpa [#allocation4], 1 }

</bundles_post_ra>
